<compile_context>
chip_gen: v7x
topology: tpu7x:2x2x1
jax: 0.10.0
libtpu: 0.0.40
codegen_flags: <defaults>
</compile_context>

<pallas_src>
import functools

import jax
import jax.numpy as jnp
from jax.experimental import pallas as pl
from jax.experimental.pallas import tpu as pltpu

SUBLANES = 8            # f32 sublane granularity (would be 16 for bf16 inputs)
TM_MAX = 4096           # max batch-tile rows; tm x 10 f32 tiles are tiny on all gens
SPLIT_MIN_ROWS = 1024   # below this: one grid step (0.35 us/step overhead dominates);
                        # above: >= 2 steps so both v7x TensorCores get work
TINY_FLOP_CUTOFF = 1 << 18  # ~256 kFLOP: below this, plain XLA matmul is strictly faster


def _round_up(x: int, m: int) -> int:
    return ((x + m - 1) // m) * m


def prepare_weight(w: jax.Array) -> jax.Array:
    """One-time parameter setup: nn.Linear weight [out_f, in_f] -> W^T [in_f, out_f].

    Done once, off the hot path, so every forward uses a pre-transposed weight with the
    contraction dim on rows. No HBM padding: Mosaic lane-pads the 10-wide dims in VMEM.
    """
    return jnp.asarray(w).T


def _linear_nobias_kernel(x_ref, wt_ref, o_ref):
    # Single-tile y = x @ W^T on the MXU with f32 accumulation. K=N=10 are padded to
    # MXU granularity inside VMEM by Mosaic; HBM traffic stays at natural width.
    o_ref[...] = jnp.dot(
        x_ref[...], wt_ref[...], preferred_element_type=jnp.float32
    ).astype(o_ref.dtype)


def _choose_tile(b: int) -> int:
    if b <= SPLIT_MIN_ROWS:
        return b  # full-dim block (always layout-legal), grid=(1,)
    # Large batch: at least 2 grid steps (v7x megacore), ragged last block, no padding.
    return min(TM_MAX, _round_up(pl.cdiv(b, 2), SUBLANES))


@functools.partial(jax.jit, static_argnames=("use_pallas",))
def nested_linear_forward(x: jax.Array, wt: jax.Array, *, use_pallas=None) -> jax.Array:
    """y = x @ W^T  (nn.Linear(in_f, out_f, bias=False) forward).

    x:  [..., in_features]
    wt: [in_features, out_features]  — output of prepare_weight(w)
    """
    in_f, out_f = wt.shape
    lead = x.shape[:-1]
    x2 = x.reshape(-1, in_f)
    b = x2.shape[0]

    if use_pallas is None:
        use_pallas = (2 * b * in_f * out_f) >= TINY_FLOP_CUTOFF
    if not use_pallas:
        # Tiny problem: the whole Pallas call would be dispatch overhead; let XLA fuse.
        return (x2 @ wt).reshape(*lead, out_f)

    tm = _choose_tile(b)
    grid = (pl.cdiv(b, tm),)

    y2 = pl.pallas_call(
        _linear_nobias_kernel,
        out_shape=jax.ShapeDtypeStruct((b, out_f), x.dtype),
        grid=grid,
        in_specs=[
            # Unpadded HBM blocks: last block dim equals the full (10-wide) array dim,
            # which is legal even though 10 < 128; lane padding happens in VMEM only.
            pl.BlockSpec((tm, in_f), lambda i: (i, 0)),
            # Constant block index -> never re-DMA'd across grid steps (revisit logic).
            pl.BlockSpec((in_f, out_f), lambda i: (0, 0)),
        ],
        out_specs=pl.BlockSpec((tm, out_f), lambda i: (i, 0)),
        compiler_params=pltpu.CompilerParams(
            # Independent batch tiles -> megacore-shardable (2 TCs on v7x).
            dimension_semantics=("parallel",),
        ),
        cost_estimate=pl.CostEstimate(
            flops=2 * b * in_f * out_f,
            bytes_accessed=4 * b * (in_f + out_f) + 4 * in_f * out_f,
            transcendentals=0,
        ),
    )(x2, wt)

    return y2.reshape(*lead, out_f)


if __name__ == "__main__":
    key = jax.random.PRNGKey(0)
    k_x, k_w = jax.random.split(key)

    batch = 8
    in_features = 10
    out_features = 10

    # Deterministic synthetic parameters (mimics nn.Linear's uniform init range).
    # TODO(synk): FSDP `wrap` / parameter sharding has no single-kernel equivalent;
    # parameters are plain device arrays here.
    bound = 1.0 / jnp.sqrt(jnp.float32(in_features))
    w = jax.random.uniform(
        k_w, (out_features, in_features), dtype=jnp.float32, minval=-bound, maxval=bound
    )
    x = jax.random.normal(k_x, (batch, in_features), dtype=jnp.float32)

    # One-time parameter setup (pre-transpose), off the hot path.
    wt = prepare_weight(w)

    # 1) Pallas path at the module's native size (forced, so the kernel is exercised).
    y = nested_linear_forward(x, wt, use_pallas=True)
    jax.block_until_ready(y)
    y_ref = x @ w.T
    assert y.shape == (batch, out_features)
    assert jnp.allclose(y, y_ref, atol=1e-5, rtol=1e-5), "mismatch vs reference"

    # 2) Larger batch exercising the multi-step grid + ragged last block path.
    x_big = jax.random.normal(jax.random.PRNGKey(1), (1030, in_features), jnp.float32)
    y_big = nested_linear_forward(x_big, wt, use_pallas=True)
    jax.block_until_ready(y_big)
    assert jnp.allclose(y_big, x_big @ w.T, atol=1e-5, rtol=1e-5), "big-batch mismatch"

    # 3) Auto heuristic: tiny batch falls back to plain XLA matmul (same semantics).
    y_auto = nested_linear_forward(x, wt)
    jax.block_until_ready(y_auto)
    assert jnp.allclose(y_auto, y_ref, atol=1e-5, rtol=1e-5), "fallback mismatch"

    print("KERNEL_OK")
</pallas_src>

<mosaic_0001>
module attributes {stable_mosaic.version = 11 : i64} {
  func.func @_linear_nobias_kernel(%arg0: i32, %arg1: memref<8x10xf32, #tpu.memory_space<vmem>>, %arg2: memref<10x10xf32, #tpu.memory_space<vmem>>, %arg3: memref<8x10xf32, #tpu.memory_space<vmem>>) attributes {dimension_semantics = [#tpu.dimension_semantics<parallel>], iteration_bounds = array<i64: 1>, scalar_prefetch = 0 : i64, scratch_operands = 0 : i64, tpu.core_type = #tpu.core_type<tc>, window_params = [{transform_indices = @transform_0, window_bounds = array<i64: 8, 10>}, {pipeline_mode = #tpu.pipeline_mode<synchronous>, transform_indices = @transform_1, window_bounds = array<i64: 10, 10>}, {transform_indices = @transform_2, window_bounds = array<i64: 8, 10>}]} {
    %c0 = arith.constant 0 : index
    %c0_0 = arith.constant 0 : index
    %0 = vector.load %arg1[%c0, %c0_0] : memref<8x10xf32, #tpu.memory_space<vmem>>, vector<8x10xf32>
    %c0_1 = arith.constant 0 : index
    %c0_2 = arith.constant 0 : index
    %1 = vector.load %arg2[%c0_1, %c0_2] : memref<10x10xf32, #tpu.memory_space<vmem>>, vector<10x10xf32>
    %cst = arith.constant dense<0.000000e+00> : vector<8x10xf32>
    %2 = tpu.matmul %0, %1, %cst {dimension_numbers = #tpu.dot_dimension_numbers<[1], [0], [0], [1], [0, 0, 1, 1], [], []>} : vector<8x10xf32>, vector<10x10xf32>, vector<8x10xf32> -> vector<8x10xf32>
    %c0_3 = arith.constant 0 : index
    %c0_4 = arith.constant 0 : index
    %3 = vector.load %arg3[%c0_3, %c0_4] : memref<8x10xf32, #tpu.memory_space<vmem>>, vector<8x10xf32>
    tpu.vector_store %arg3[%c0_3, %c0_4], %2 {strides = array<i32>} : memref<8x10xf32, #tpu.memory_space<vmem>>, vector<8x10xf32>,
    return
  }
  func.func @transform_0(%arg0: i32) -> (i32, i32) {
    %c0_i32 = arith.constant 0 : i32
    %c0_i32_0 = arith.constant 0 : i32
    return %arg0, %c0_i32 : i32, i32
  }
  func.func @transform_1(%arg0: i32) -> (i32, i32) {
    %c0_i32 = arith.constant 0 : i32
    %c0_i32_0 = arith.constant 0 : i32
    %c0_i32_1 = arith.constant 0 : i32
    return %c0_i32, %c0_i32_0 : i32, i32
  }
  func.func @transform_2(%arg0: i32) -> (i32, i32) {
    %c0_i32 = arith.constant 0 : i32
    %c0_i32_0 = arith.constant 0 : i32
    return %arg0, %c0_i32 : i32, i32
  }
}

</mosaic_0001>

<bundles_post_ra>
// kernel: nested_linear_forward.1
= control target key start
LH: loop header
LB: loop body
LE: loop exit
PB: predicated region body
PF: predicated region fallthrough
CT: control target
= control target key end

     0   :  { %7 = vsyncpa [#allocation3], 0  ;;  %s300_s0 = inlined_call_operand.hbm [shape: f32[8,10], index: 0, kind: input, shape index: {}]   ;;  %s301_s1 = inlined_call_operand.hbm [shape: f32[10,10], index: 1, kind: input, shape index: {}]   ;;  %s302_s2 = inlined_call_operand.hbm [shape: f32[8,10], index: 2, kind: output, shape index: {}]  }
   0x1   :  { %8 = vsyncpa [#allocation6], 0 }
   0x2   :  { %9 = vsyncpa [#allocation4], 0  ;;  %s233_s9 = smov [#allocation2]   ;;  %s234_s11 = smov [#allocation5]  }
   0x3   :  { %s16_s10 = sshll.u32 %s233_s9, 4  ;;  %s25_s12 = sshll.u32 %s234_s11, 4  ;;  %s17_s10 = int_to_ptr.vmem [resolvable:$true] %s16_s10  ;;  %s257_s12 = int_to_ptr.vmem [resolvable:$true] %s25_s12 }
   0x4   :  { %s161_s15 = scalar_lea.hbm %s300_s0, 128 }
   0x5   :  { %p162_p0 = scmp.ne.s32.totalorder %s300_s0, %s161_s15  ;;  %p165_p1 = scmp.lt.u32.totalorder %s161_s15, %s300_s0 }
   0x7   :  { %p167_p2 = pnand %p165_p1, %p162_p0 }
   0x9   :  { %170 = shalt.err (!%p167_p2)
}
   0xa   :  { %s171_s20 = scalar_lea.vmem %s17_s10, 128  ;;  %p176_p4 = scmp.lt.s32.totalorder %s17_s10, %s17_s10 }
   0xb   :  { %p172_p3 = scmp.ne.s32.totalorder %s17_s10, %s171_s20  ;;  %p177_p5 = scmp.lt.s32.totalorder %s171_s20, %s171_s20 }
   0xd   :  { %p178_p6 = por %p177_p5, %p176_p4 }
   0xf   :  { %p179_p7 = pnand %p178_p6, %p172_p3 }
  0x11   :  { %182 = shalt.err (!%p179_p7)
}
  0x12   :  { %19 = dma.hbm_to_vmem [thread:$0]  %s300_s0, 128, %s17_s10, [#allocation3]  }
  0x13   :  { %s183_s25 = scalar_lea.hbm %s301_s1, 256 }
  0x14   :  { %p184_p8 = scmp.ne.s32.totalorder %s301_s1, %s183_s25  ;;  %p187_p9 = scmp.lt.u32.totalorder %s183_s25, %s301_s1 }
  0x16   :  { %p189_p10 = pnand %p187_p9, %p184_p8 }
  0x18   :  { %192 = shalt.err (!%p189_p10)
}
  0x19   :  { %s193_s30 = scalar_lea.vmem %s257_s12, 256  ;;  %p198_p12 = scmp.lt.s32.totalorder %s257_s12, %s257_s12 }
  0x1a   :  { %p194_p11 = scmp.ne.s32.totalorder %s257_s12, %s193_s30  ;;  %p199_p13 = scmp.lt.s32.totalorder %s193_s30, %s193_s30 }
  0x1c   :  { %p200_p0 = por %p199_p13, %p198_p12 }
  0x1e   :  { %p201_p1 = pnand %p200_p0, %p194_p11 }
  0x20   :  { %204 = shalt.err (!%p201_p1)
}
  0x21   :  { %s235_s0 = smov 128   ;;  %s236_s3 = smov 8  }
  0x22   :  { %31 = dma.hbm_to_vmem [thread:$0]  %s301_s1, 256, %s257_s12, [#allocation6], %s235_s0, %s235_s0, %s236_s3  }
  0x23   :  { %227 = dma.done.wait [#allocation3], 128  }
  0x24   :  { %228 = vsyncadd [#allocation3], 4294967168 }
  0x25   :  { %229 = dma.done.wait [#allocation6], 256  }
  0x26   :  { %230 = vsyncadd [#allocation6], 4294967040  ;;  %v237_v0 = vmov 0.0|0.0   ;;  %vm238_vm0 = vmmov 0   ;;  %v239_v1 = vmov 0.0   ;;  %vm45_vm1 = vcmask 1041408  }
  0x27   :  { %148 = vmatprep.subr.bf16.mxu0 %v237_v0  ;;  %145 = vmatprep.mubr.msk.f32.mxu0 %vm238_vm0, %v239_v1  ;;  %v39_v2 = vld [vmem:[#allocation5] sm:$0xff]  ;;  %v40_v3 = vld [vmem:[#allocation5 + $0x8] sm:$0x3]  ;;  %vm240_vm2 = vmmov 1   ;;  %v38_v5 = vld [vmem:[#allocation2] sm:$0xff]  ;;  %vm41_vm4 = vcmask 80896  }
  0x28   :  { %vm150_vm3 = vmpackc.low %vm45_vm1, %vm240_vm2  ;;  %v149_v4 = vpack.c.bf16 %v40_v3, %v39_v2  ;;  %s241_s1 = smov [#allocation7]  }
  0x29   :  { %s126_s6 = sshll.u32 %s241_s1, 4  ;;  %s127_s6 = int_to_ptr.vmem [resolvable:$true] %s126_s6 }
  0x2a   :  { %151 = vmatpush3.bf16.msk.msra.mxu0 %vm150_vm3, %v149_v4  ;;  %s205_s7 = scalar_lea.vmem %s127_s6, 128  ;;  %p210_p3 = scmp.lt.s32.totalorder %s127_s6, %s127_s6 }
  0x2b   :  { %p206_p2 = scmp.ne.s32.totalorder %s127_s6, %s205_s7  ;;  %p211_p4 = scmp.lt.s32.totalorder %s205_s7, %s205_s7 }
  0x2d   :  { %146 = vmatmul.mubr.msk.f32.vlgmr.msra.gmra.mrb[0].mxu0 %vm41_vm4, %v38_v5  ;;  %p212_p5 = por %p211_p4, %p210_p3 }
  0x2f   :  { %p213_p6 = pnand %p212_p5, %p206_p2 }
 0x100   :  { %v115_v6 = vpop.f32.mrb[0].mxu0 }
 0x101   :  { %119 = vst.msk [vmem:[#allocation7] sm:$0xff] %vm41_vm4, %v115_v6  ;;  %v147_v7 = vpop.f32.mrb[1].mxu0 }
 0x102   :  { %216 = shalt.err (!%p213_p6)
}
 0x103   :  { %s217_s10 = scalar_lea.hbm %s302_s2, 128 }
 0x104   :  { %p218_p7 = scmp.ne.s32.totalorder %s302_s2, %s217_s10  ;;  %p221_p8 = scmp.lt.u32.totalorder %s217_s10, %s302_s2 }
 0x106   :  { %p223_p9 = pnand %p221_p8, %p218_p7 }
 0x108   :  { %226 = shalt.err (!%p223_p9)
}
 0x109   :  { %129 = dma.vmem_to_hbm [thread:$0]  %s127_s6, 128, %s302_s2, [#allocation4]  }
 0x10a   :  { %231 = dma.done.wait [#allocation4], 128  }
 0x10b   :  { %232 = vsyncadd [#allocation4], 4294967168 }
 0x10c   :  { %133 = vsyncpa [#allocation3], 1 }
 0x10d   :  { %134 = vsyncpa [#allocation6], 1 }
 0x10e   :  { %135 = vsyncpa [#allocation4], 1 }

</bundles_post_ra>
